<compile_context>
chip_gen: v5e
topology: v5e:2x2
jax: 0.10.0
libtpu: 0.0.40
codegen_flags: <defaults>
</compile_context>

<pallas_src>
import functools

import jax
import jax.numpy as jnp
from jax.experimental import pallas as pl
from jax.experimental.pallas import tpu as pltpu


# ---------------------------------------------------------------------------
# Pallas kernel: elementwise add + clamp (the hot path of add_quant).
# ---------------------------------------------------------------------------
def _add_clamp_kernel(a1_ref, a2_ref, o_ref, *, thd_neg, thd_pos):
    x = a1_ref[...] + a2_ref[...]
    lo = jnp.asarray(thd_neg, dtype=x.dtype)   # keep clip in the input dtype
    hi = jnp.asarray(thd_pos, dtype=x.dtype)
    o_ref[...] = jnp.clip(x, lo, hi)


def _add_clamp_pallas(a1_2d, a2_2d, thd_neg, thd_pos, tile_rows):
    rows, lanes = a1_2d.shape
    assert lanes % 128 == 0 and rows % tile_rows == 0
    spec = pl.BlockSpec((tile_rows, lanes), lambda i: (i, 0))
    kernel = functools.partial(_add_clamp_kernel, thd_neg=thd_neg, thd_pos=thd_pos)
    return pl.pallas_call(
        kernel,
        out_shape=jax.ShapeDtypeStruct((rows, lanes), a1_2d.dtype),
        grid=(rows // tile_rows,),
        in_specs=[spec, spec],
        out_specs=spec,
        compiler_params=pltpu.CompilerParams(
            dimension_semantics=("parallel",)   # lets v7x shard the stream over 2 TCs
        ),
    )(a1_2d, a2_2d)


# ---------------------------------------------------------------------------
# Layout selection: copy-free, lane-dense 2-D view + VMEM-budgeted tile rows.
# ---------------------------------------------------------------------------
_TARGET_TILE_BYTES = 2 * 1024 * 1024      # ~2 MiB / operand  -> ~12 MiB VMEM total
_MAX_SINGLE_BLOCK_BYTES = 8 * 1024 * 1024


def _choose_layout(n, itemsize):
    """Return (lanes, rows, tile_rows) for a copy-free view, or None to use padding."""
    best = None
    for lanes in (8192, 4096, 2048, 1024, 512, 256, 128):
        if n % lanes:
            continue
        rows = n // lanes
        if rows % 8 == 0:                 # clean (8,128)-aligned tiling possible
            best = (lanes, rows, True)
            break
        if best is None:
            best = (lanes, rows, False)
    if best is None:
        return None                       # element count not a multiple of 128
    lanes, rows, aligned = best

    if not aligned:
        # Only legal block is the full row extent (full-array-dims exception).
        if rows * lanes * itemsize > _MAX_SINGLE_BLOCK_BYTES:
            return None                   # too big for one VMEM block -> pad path
        return lanes, rows, rows

    max_tr = max(8, (_TARGET_TILE_BYTES // (lanes * itemsize)) // 8 * 8)
    tile_rows = min(rows, max_tr)
    # Keep the grid length >= 2 when the shape allows (v7x megacore sharding).
    if tile_rows == rows and rows >= 16 and (rows // 2) % 8 == 0:
        tile_rows = rows // 2
    # Largest multiple of 8 (<= tile_rows) that divides rows; bounded scan, >= 8.
    while rows % tile_rows:
        tile_rows -= 8
    return lanes, rows, tile_rows


# ---------------------------------------------------------------------------
# add_quant wrapper (threshold setup, scale max, free reshape glue).
# ---------------------------------------------------------------------------
class AddQuantPallas:
    """Mirrors add_quant(bit=9, all_positive=False, symmetric=True,
    quant_method=0, shift=0, int_flag=True)."""

    def __init__(self, bit=9, all_positive=False, symmetric=True,
                 quant_method=0, shift=0):
        self.bit = bit
        if all_positive:
            self.thd_neg = 0
            self.thd_pos = 2 ** bit - 1
        elif symmetric:
            self.thd_neg = -(2 ** (bit - 1) - 1)
            self.thd_pos = 2 ** (bit - 1) - 1
        else:
            self.thd_neg = -(2 ** (bit - 1))
            self.thd_pos = 2 ** (bit - 1) - 1
        self.quant_method = quant_method
        self.shift = shift
        self.int_flag = True

    def __call__(self, input1, input2):
        if not (isinstance(input1, tuple) and isinstance(input2, tuple)):
            raise ValueError("add_quant module need quantized input. ")
        if self.quant_method != 0 or self.shift != 0:
            # TODO(synk): other branches require twn_n / LSQ quantizer state.
            raise NotImplementedError("only quant_method=0, shift=0 implemented")

        a1_int, s1 = input1
        a2_int, s2 = input2

        # scalar scale selection: stays on device (no host sync, jit-friendly)
        s = jnp.maximum(jnp.asarray(s1), jnp.asarray(s2))

        orig_shape = a1_int.shape
        dtype = a1_int.dtype
        n = a1_int.size
        itemsize = jnp.dtype(dtype).itemsize

        layout = _choose_layout(n, itemsize)
        if layout is not None:
            lanes, rows, tile_rows = layout
            # contiguous reshape: a free view, no HBM copy
            a1_2d = a1_int.reshape(rows, lanes)
            a2_2d = a2_int.reshape(rows, lanes)
            out_2d = _add_clamp_pallas(a1_2d, a2_2d, self.thd_neg, self.thd_pos,
                                       tile_rows)
            out = out_2d.reshape(orig_shape)
        else:
            # Rare fallback: element count not 128-aligned -> minimal zero-padding
            # (zero padding is clamp-invariant and is sliced off afterwards).
            lanes = 512
            unit = 8 * lanes
            n_pad = -(-n // unit) * unit
            a1_f = jnp.pad(a1_int.reshape(-1), (0, n_pad - n))
            a2_f = jnp.pad(a2_int.reshape(-1), (0, n_pad - n))
            rows = n_pad // lanes
            _, _, tile_rows = _choose_layout(n_pad, itemsize)
            out_2d = _add_clamp_pallas(a1_f.reshape(rows, lanes),
                                       a2_f.reshape(rows, lanes),
                                       self.thd_neg, self.thd_pos, tile_rows)
            out = out_2d.reshape(-1)[:n].reshape(orig_shape)

        if self.int_flag:
            return (out, s)
        return out * s


# ---------------------------------------------------------------------------
# Demo / correctness check.
# ---------------------------------------------------------------------------
if __name__ == "__main__":
    key = jax.random.PRNGKey(0)
    k1, k2 = jax.random.split(key)

    # layout: NCHW (same as the PyTorch module would see for conv activations)
    shape = (2, 4, 16, 16)
    bit = 9
    thd_pos = 2 ** (bit - 1) - 1  # 255

    # synthetic quantized-int activations (stored as float, like PyTorch does;
    # int16 storage would also work and halves HBM traffic)
    a1_int = jnp.round(jax.random.uniform(k1, shape, jnp.float32, -300.0, 300.0))
    a2_int = jnp.round(jax.random.uniform(k2, shape, jnp.float32, -300.0, 300.0))
    s1 = jnp.float32(0.03)
    s2 = jnp.float32(0.07)

    mod = AddQuantPallas(bit=bit, all_positive=False, symmetric=True,
                         quant_method=0, shift=0)
    out_int, out_scale = mod((a1_int, s1), (a2_int, s2))
    jax.block_until_ready(out_int)
    jax.block_until_ready(out_scale)

    # reference in plain JAX
    ref_int = jnp.clip(a1_int + a2_int, -thd_pos, thd_pos)
    ref_scale = jnp.maximum(s1, s2)

    assert out_int.shape == shape and out_int.dtype == jnp.float32
    assert jnp.allclose(out_int, ref_int)
    assert jnp.allclose(out_scale, ref_scale)

    print("KERNEL_OK")
</pallas_src>

<mosaic_0001>
module attributes {stable_mosaic.version = 11 : i64} {
  func.func @_add_clamp_kernel(%arg0: i32, %arg1: memref<8x256xf32, #tpu.memory_space<vmem>>, %arg2: memref<8x256xf32, #tpu.memory_space<vmem>>, %arg3: memref<8x256xf32, #tpu.memory_space<vmem>>) attributes {dimension_semantics = [#tpu.dimension_semantics<parallel>], iteration_bounds = array<i64: 1>, scalar_prefetch = 0 : i64, scratch_operands = 0 : i64, tpu.core_type = #tpu.core_type<tc>, window_params = [{transform_indices = @transform_0, window_bounds = array<i64: 8, 256>}, {transform_indices = @transform_1, window_bounds = array<i64: 8, 256>}, {transform_indices = @transform_2, window_bounds = array<i64: 8, 256>}]} {
    %c0 = arith.constant 0 : index
    %c0_0 = arith.constant 0 : index
    %0 = vector.load %arg1[%c0, %c0_0] : memref<8x256xf32, #tpu.memory_space<vmem>>, vector<8x256xf32>
    %c0_1 = arith.constant 0 : index
    %c0_2 = arith.constant 0 : index
    %1 = vector.load %arg2[%c0_1, %c0_2] : memref<8x256xf32, #tpu.memory_space<vmem>>, vector<8x256xf32>
    %2 = arith.addf %0, %1 : vector<8x256xf32>
    %cst = arith.constant -2.550000e+02 : f32
    %cst_3 = arith.constant 2.550000e+02 : f32
    %3 = vector.broadcast %cst : f32 to vector<8x256xf32>
    %4 = arith.maximumf %3, %2 : vector<8x256xf32>
    %5 = vector.broadcast %cst_3 : f32 to vector<8x256xf32>
    %6 = arith.minimumf %5, %4 : vector<8x256xf32>
    %c0_4 = arith.constant 0 : index
    %c0_5 = arith.constant 0 : index
    %7 = vector.load %arg3[%c0_4, %c0_5] : memref<8x256xf32, #tpu.memory_space<vmem>>, vector<8x256xf32>
    tpu.vector_store %arg3[%c0_4, %c0_5], %6 {strides = array<i32>} : memref<8x256xf32, #tpu.memory_space<vmem>>, vector<8x256xf32>,
    return
  }
  func.func @transform_0(%arg0: i32) -> (i32, i32) {
    %c0_i32 = arith.constant 0 : i32
    %c0_i32_0 = arith.constant 0 : i32
    return %arg0, %c0_i32 : i32, i32
  }
  func.func @transform_1(%arg0: i32) -> (i32, i32) {
    %c0_i32 = arith.constant 0 : i32
    %c0_i32_0 = arith.constant 0 : i32
    return %arg0, %c0_i32 : i32, i32
  }
  func.func @transform_2(%arg0: i32) -> (i32, i32) {
    %c0_i32 = arith.constant 0 : i32
    %c0_i32_0 = arith.constant 0 : i32
    return %arg0, %c0_i32 : i32, i32
  }
}

</mosaic_0001>

<bundles_post_ra>
// kernel: tpu_custom_call.1
= control target key start
LH: loop header
LB: loop body
LE: loop exit
PB: predicated region body
PF: predicated region fallthrough
CT: control target
= control target key end

     0   :  { %7 = vsyncpa [#allocation3], 0  ;;  %s180_s0 = inlined_call_operand.hbm [shape: f32[8,256], index: 0, kind: input, shape index: {}]   ;;  %s181_s1 = inlined_call_operand.hbm [shape: f32[8,256], index: 1, kind: input, shape index: {}]   ;;  %s182_s2 = inlined_call_operand.hbm [shape: f32[8,256], index: 2, kind: output, shape index: {}]  }
   0x1   :  { %8 = vsyncpa [#allocation6], 0 }
   0x2   :  { %9 = vsyncpa [#allocation4], 0  ;;  %s15_s11 = sshll.u32 %s180_s0, 4  ;;  %s153_s12 = smov [#allocation2]   ;;  %s16_s11 = int_to_ptr.hbm [resolvable:$true] %s15_s11 }
   0x3   :  { %s17_s13 = sshll.u32 %s153_s12, 4  ;;  %s26_s16 = sshll.u32 %s181_s1, 4  ;;  %s18_s13 = int_to_ptr.vmem [resolvable:$true] %s17_s13  ;;  %s27_s16 = int_to_ptr.hbm [resolvable:$true] %s26_s16 }
   0x4   :  { %20 = dma.hbm_to_vmem [thread:$0]  %s16_s11, 256, %s18_s13, [#allocation3]  }
   0x5   :  { %s154_s17 = smov [#allocation5]  }
   0x6   :  { %s28_s18 = sshll.u32 %s154_s17, 4  ;;  %s29_s18 = int_to_ptr.vmem [resolvable:$true] %s28_s18 }
   0x7   :  { %31 = dma.hbm_to_vmem [thread:$0]  %s27_s16, 256, %s29_s18, [#allocation6]  }
   0x8   :  { %147 = dma.done.wait [#allocation3], 256  }
   0x9   :  { %148 = vsyncadd [#allocation3], 4294967040 }
   0xa   :  { %149 = dma.done.wait [#allocation6], 256  }
   0xb   :  { %150 = vsyncadd [#allocation6], 4294967040  ;;  %v40_v0 = vld [vmem:[#allocation2] sm:$0xff]  ;;  %v42_v1 = vld [vmem:[#allocation5] sm:$0xff]  ;;  %s155_s0 = smov [#allocation7]   ;;  %s59_s1 = sshll.u32 %s182_s2, 4  ;;  %s60_s1 = int_to_ptr.hbm [resolvable:$true] %s59_s1 }
   0xc   :  { %v41_v2 = vld [vmem:[#allocation2 + $0x8] sm:$0xff]  ;;  %v44_v3 = vadd.f32 %v42_v1, %v40_v0  ;;  %v43_v4 = vld [vmem:[#allocation5 + $0x8] sm:$0xff]  ;;  %s57_s19 = sshll.u32 %s155_s0, 4  ;;  %s58_s19 = int_to_ptr.vmem [resolvable:$true] %s57_s19 }
   0xd   :  { %v45_v5 = vadd.f32 %v43_v4, %v41_v2 }
   0xe   :  { %v70_v6 = vclamps-f32 %v44_v3, 255.0 }
   0xf   :  { %v71_v7 = vclamps-f32 %v45_v5, 255.0 }
  0x10   :  { %50 = vst [vmem:[#allocation7] sm:$0xff] %v70_v6 }
  0x11   :  { %51 = vst [vmem:[#allocation7 + $0x8] sm:$0xff] %v71_v7 }
  0x12   :  { %62 = dma.vmem_to_hbm [thread:$0]  %s58_s19, 256, %s60_s1, [#allocation4]  }
  0x13   :  { %151 = dma.done.wait [#allocation4], 256  }
  0x14   :  { %152 = vsyncadd [#allocation4], 4294967040 }
  0x15   :  { %67 = vsyncpa [#allocation3], 1 }
  0x16   :  { %68 = vsyncpa [#allocation6], 1 }
  0x17   :  { %69 = vsyncpa [#allocation4], 1 }

</bundles_post_ra>
